<compile_context>
chip_gen: v7x
topology: tpu7x:2x2x1
jax: 0.10.0
libtpu: 0.0.40
codegen_flags: <defaults>
</compile_context>

<pallas_src>
import numpy as np

import jax
import jax.numpy as jnp
from jax.experimental import pallas as pl
from jax.experimental.pallas import tpu as pltpu


# ---------------------------------------------------------------------------
# Pallas kernels
# ---------------------------------------------------------------------------
def _interp_matmul_kernel(a_ref, x_ref, o_ref):
    # o[p, l] = sum_k a[p, k] * x[k, l]   (lane-dense along l)
    o_ref[...] = jnp.dot(a_ref[...], x_ref[...],
                         preferred_element_type=jnp.float32)


def _conv_taps_stats_kernel(x0_ref, x1_ref, x2_ref, w_ref, b_ref, y_ref, s_ref):
    # x{0,1,2}_ref: (1, 1, H+2, W+2, Cin) bf16 halo slabs for frames t, t+1, t+2
    # w_ref: (27*Cin, Cout) bf16 ; b_ref: (1, Cout) f32
    # y_ref: (1, 1, H*W, Cout) f32 conv output (pre-BN)
    # s_ref: (1, 1, 2, Cout) f32 partial BN statistics [sum, sumsq]
    hp = x0_ref.shape[2]
    wp = x0_ref.shape[3]
    cin = x0_ref.shape[4]
    H, W = hp - 2, wp - 2

    frames = (x0_ref[0, 0], x1_ref[0, 0], x2_ref[0, 0])   # (H+2, W+2, Cin) bf16

    # in-kernel im2col: gather the 27 shifted windows and stack along channels
    cols = []
    for kd in range(3):
        f = frames[kd]
        for kh in range(3):
            for kw in range(3):
                win = f[kh:kh + H, kw:kw + W, :]           # (H, W, Cin)
                cols.append(win.reshape(H * W, cin))
    cols = jnp.concatenate(cols, axis=-1)                  # (H*W, 27*Cin) bf16

    acc = jnp.dot(cols, w_ref[...], preferred_element_type=jnp.float32)
    acc = acc + b_ref[...]                                 # (H*W, Cout) f32
    y_ref[0, 0] = acc

    ssum = jnp.sum(acc, axis=0, keepdims=True)             # (1, Cout)
    ssq = jnp.sum(acc * acc, axis=0, keepdims=True)        # (1, Cout)
    s_ref[0, 0] = jnp.concatenate([ssum, ssq], axis=0)     # (2, Cout)


def _bn_relu_kernel(y_ref, scale_ref, shift_ref, o_ref):
    # y_ref/o_ref: (1, 1, H*W, Cout) ; scale/shift: (1, Cout)
    y = y_ref[0, 0]
    o_ref[0, 0] = jnp.maximum(y * scale_ref[...] + shift_ref[...], 0.0)


# ---------------------------------------------------------------------------
# Wrappers
# ---------------------------------------------------------------------------
def _interp_matrix(n_in, n_out):
    """PyTorch bilinear, align_corners=True interpolation matrix (n_out, n_in)."""
    a = np.zeros((n_out, n_in), np.float32)
    if n_in == 1:
        a[:, 0] = 1.0
        return a
    src = np.arange(n_out, dtype=np.float64) * (n_in - 1) / (n_out - 1)
    lo = np.clip(np.floor(src).astype(np.int64), 0, n_in - 2)
    frac = src - lo
    a[np.arange(n_out), lo] = (1.0 - frac).astype(np.float32)
    a[np.arange(n_out), lo + 1] = frac.astype(np.float32)
    return a


def _apply_interp(a, x2d):
    """a: (M, K) f32, x2d: (K, L) f32 -> (M, L) f32, gridded over lanes."""
    M, K = a.shape
    L = x2d.shape[1]
    lt = min(512, ((L + 127) // 128) * 128)          # lane tile, multiple of 128
    l_pad = ((L + lt - 1) // lt) * lt
    if l_pad != L:
        x2d = jnp.pad(x2d, ((0, 0), (0, l_pad - L)))

    y = pl.pallas_call(
        _interp_matmul_kernel,
        grid=(l_pad // lt,),
        out_shape=jax.ShapeDtypeStruct((M, l_pad), jnp.float32),
        in_specs=[pl.BlockSpec((M, K), lambda j: (0, 0)),
                  pl.BlockSpec((K, lt), lambda j: (0, j))],
        out_specs=pl.BlockSpec((M, lt), lambda j: (0, j)),
        compiler_params=pltpu.CompilerParams(
            dimension_semantics=("parallel",)),
    )(a, x2d)
    return y[:, :L]


def upsample2x_bilinear_per_frame(x1):
    """x1: (N, C, T, H, W) NCDHW -> (N, T, 2H, 2W, C) channels-last.

    Separable bilinear (align_corners=True), matching the torch per-t loop.
    """
    N, C, T, H, W = x1.shape
    a_h = jnp.asarray(_interp_matrix(H, 2 * H), jnp.float32)   # (2H, H)
    a_w = jnp.asarray(_interp_matrix(W, 2 * W), jnp.float32)   # (2W, W)

    # interpolate along H (H on sublanes, everything else lane-dense)
    xh = jnp.transpose(x1, (3, 0, 1, 2, 4)).reshape(H, N * C * T * W)
    yh = _apply_interp(a_h, xh).reshape(2 * H, N, C, T, W)
    # interpolate along W
    xw = jnp.transpose(yh, (4, 1, 2, 3, 0)).reshape(W, N * C * T * 2 * H)
    yw = _apply_interp(a_w, xw).reshape(2 * W, N, C, T, 2 * H)
    # (2W, N, C, T, 2H) -> (N, T, 2H, 2W, C)
    return jnp.transpose(yw, (1, 3, 4, 0, 2))


def _conv_bn_relu_cl(xc, w, b, gamma, beta, eps=1e-5):
    """Fused Conv3d(k=3,s=1,p=1) + BatchNorm3d(training batch stats) + ReLU.

    xc: (N, T, H, W, Cin) channels-last ; w: (Cout, Cin, 3, 3, 3) PyTorch layout.
    Returns (N, T, H, W, Cout) float32.
    """
    N, T, H, W, cin = xc.shape
    cout = w.shape[0]

    # zero-pad T/H/W by 1 on each side; bf16 operands for the MXU
    xp = jnp.pad(xc, ((0, 0), (1, 1), (1, 1), (1, 1), (0, 0))).astype(jnp.bfloat16)
    w_flat = (jnp.transpose(w, (2, 3, 4, 1, 0))
              .reshape(27 * cin, cout).astype(jnp.bfloat16))
    b_row = b.reshape(1, cout).astype(jnp.float32)

    # ---- pass 1: conv + per-block BN partial statistics -------------------
    y, s = pl.pallas_call(
        _conv_taps_stats_kernel,
        grid=(N, T),
        out_shape=(jax.ShapeDtypeStruct((N, T, H * W, cout), jnp.float32),
                   jax.ShapeDtypeStruct((N, T, 2, cout), jnp.float32)),
        in_specs=[
            pl.BlockSpec((1, 1, H + 2, W + 2, cin),
                         lambda n, t: (n, t, 0, 0, 0)),
            pl.BlockSpec((1, 1, H + 2, W + 2, cin),
                         lambda n, t: (n, t + 1, 0, 0, 0)),
            pl.BlockSpec((1, 1, H + 2, W + 2, cin),
                         lambda n, t: (n, t + 2, 0, 0, 0)),
            pl.BlockSpec((27 * cin, cout), lambda n, t: (0, 0)),
            pl.BlockSpec((1, cout), lambda n, t: (0, 0)),
        ],
        out_specs=(
            pl.BlockSpec((1, 1, H * W, cout), lambda n, t: (n, t, 0, 0)),
            pl.BlockSpec((1, 1, 2, cout), lambda n, t: (n, t, 0, 0)),
        ),
        compiler_params=pltpu.CompilerParams(
            dimension_semantics=("parallel", "parallel")),
    )(xp, xp, xp, w_flat, b_row)

    # ---- tiny cross-block reduction for global batch statistics -----------
    tot = jnp.sum(s, axis=(0, 1))                    # (2, Cout)
    cnt = float(N * T * H * W)
    mean = tot[0] / cnt
    var = tot[1] / cnt - mean * mean                 # biased, training-mode BN
    inv = jax.lax.rsqrt(var + eps)
    scale = (gamma * inv).reshape(1, cout).astype(jnp.float32)
    shift = (beta - mean * gamma * inv).reshape(1, cout).astype(jnp.float32)

    # ---- pass 2: normalize + ReLU ------------------------------------------
    o = pl.pallas_call(
        _bn_relu_kernel,
        grid=(N, T),
        out_shape=jax.ShapeDtypeStruct((N, T, H * W, cout), jnp.float32),
        in_specs=[pl.BlockSpec((1, 1, H * W, cout), lambda n, t: (n, t, 0, 0)),
                  pl.BlockSpec((1, cout), lambda n, t: (0, 0)),
                  pl.BlockSpec((1, cout), lambda n, t: (0, 0))],
        out_specs=pl.BlockSpec((1, 1, H * W, cout), lambda n, t: (n, t, 0, 0)),
        compiler_params=pltpu.CompilerParams(
            dimension_semantics=("parallel", "parallel")),
    )(y, scale, shift)

    return o.reshape(N, T, H, W, cout)


def up_forward(x1, x2, params):
    """Up.forward(x1, x2) with bilinear upsampling (see layout comment)."""
    x1u = upsample2x_bilinear_per_frame(x1)          # (N, T, 2H, 2W, C1)
    x2c = jnp.transpose(x2, (0, 2, 3, 4, 1))         # (N, T, H2, W2, C2)

    dz = x2c.shape[1] - x1u.shape[1]
    dy = x2c.shape[2] - x1u.shape[2]
    dx = x2c.shape[3] - x1u.shape[3]
    x1u = jnp.pad(x1u, ((0, 0),
                        (dz // 2, dz - dz // 2),
                        (dy // 2, dy - dy // 2),
                        (dx // 2, dx - dx // 2),
                        (0, 0)))

    x = jnp.concatenate([x2c, x1u], axis=-1)         # channels-last concat
    h = _conv_bn_relu_cl(x, params["w1"], params["b1"], params["g1"], params["be1"])
    o = _conv_bn_relu_cl(h, params["w2"], params["b2"], params["g2"], params["be2"])
    return jnp.transpose(o, (0, 4, 1, 2, 3))         # back to NCDHW


# ---------------------------------------------------------------------------
# Pure-JAX reference (for a sanity check only)
# ---------------------------------------------------------------------------
def _ref_conv_bn_relu(x, w, b, gamma, beta, eps=1e-5):
    y = jax.lax.conv_general_dilated(
        x, w, window_strides=(1, 1, 1), padding=((1, 1), (1, 1), (1, 1)),
        dimension_numbers=("NCDHW", "OIDHW", "NCDHW"))
    y = y + b.reshape(1, -1, 1, 1, 1)
    mean = jnp.mean(y, axis=(0, 2, 3, 4), keepdims=True)
    var = jnp.mean((y - mean) ** 2, axis=(0, 2, 3, 4), keepdims=True)
    y = (y - mean) * jax.lax.rsqrt(var + eps)
    y = y * gamma.reshape(1, -1, 1, 1, 1) + beta.reshape(1, -1, 1, 1, 1)
    return jnp.maximum(y, 0.0)


def _ref_forward(x1, x2, params):
    N, C, T, H, W = x1.shape
    a_h = jnp.asarray(_interp_matrix(H, 2 * H))
    a_w = jnp.asarray(_interp_matrix(W, 2 * W))
    x1u = jnp.einsum("ph,ncthw->nctpw", a_h, x1)
    x1u = jnp.einsum("qw,nctpw->nctpq", a_w, x1u)
    x = jnp.concatenate([x2, x1u], axis=1)
    h = _ref_conv_bn_relu(x, params["w1"], params["b1"], params["g1"], params["be1"])
    return _ref_conv_bn_relu(h, params["w2"], params["b2"], params["g2"], params["be2"])


# ---------------------------------------------------------------------------
if __name__ == "__main__":
    in_channels, out_channels = 8, 4          # Up(in_channels=8, out_channels=4)
    N, T = 2, 4
    H1 = W1 = 8                                # x1 spatial (pre-upsample)
    H2 = W2 = 16                               # x2 spatial (skip connection)

    key = jax.random.PRNGKey(0)
    kx1, kx2, kw1, kb1, kw2, kb2 = jax.random.split(key, 6)

    x1 = jax.random.normal(kx1, (N, in_channels // 2, T, H1, W1), jnp.float32)
    x2 = jax.random.normal(kx2, (N, in_channels // 2, T, H2, W2), jnp.float32)

    params = {
        "w1": 0.1 * jax.random.normal(kw1, (out_channels, in_channels, 3, 3, 3),
                                      jnp.float32),
        "b1": 0.1 * jax.random.normal(kb1, (out_channels,), jnp.float32),
        "g1": jnp.ones((out_channels,), jnp.float32),    # BN default init
        "be1": jnp.zeros((out_channels,), jnp.float32),
        "w2": 0.1 * jax.random.normal(kw2, (out_channels, out_channels, 3, 3, 3),
                                      jnp.float32),
        "b2": 0.1 * jax.random.normal(kb2, (out_channels,), jnp.float32),
        "g2": jnp.ones((out_channels,), jnp.float32),
        "be2": jnp.zeros((out_channels,), jnp.float32),
    }

    out = jax.block_until_ready(up_forward(x1, x2, params))
    assert out.shape == (N, out_channels, T, H2, W2), out.shape

    ref = jax.block_until_ready(_ref_forward(x1, x2, params))
    err = float(jnp.max(jnp.abs(out - ref)))
    assert err < 5e-2, f"mismatch vs reference: {err}"

    print("KERNEL_OK")
</pallas_src>

<mosaic_0001>
module attributes {stable_mosaic.version = 11 : i64} {
  func.func @_interp_matmul_kernel(%arg0: i32, %arg1: memref<16x8xf32, #tpu.memory_space<vmem>>, %arg2: memref<8x256xf32, #tpu.memory_space<vmem>>, %arg3: memref<16x256xf32, #tpu.memory_space<vmem>>) attributes {dimension_semantics = [#tpu.dimension_semantics<parallel>], iteration_bounds = array<i64: 1>, scalar_prefetch = 0 : i64, scratch_operands = 0 : i64, tpu.core_type = #tpu.core_type<tc>, window_params = [{pipeline_mode = #tpu.pipeline_mode<synchronous>, transform_indices = @transform_0, window_bounds = array<i64: 16, 8>}, {transform_indices = @transform_1, window_bounds = array<i64: 8, 256>}, {transform_indices = @transform_2, window_bounds = array<i64: 16, 256>}]} {
    %c0 = arith.constant 0 : index
    %c0_0 = arith.constant 0 : index
    %0 = vector.load %arg1[%c0, %c0_0] : memref<16x8xf32, #tpu.memory_space<vmem>>, vector<16x8xf32>
    %c0_1 = arith.constant 0 : index
    %c0_2 = arith.constant 0 : index
    %1 = vector.load %arg2[%c0_1, %c0_2] : memref<8x256xf32, #tpu.memory_space<vmem>>, vector<8x256xf32>
    %cst = arith.constant dense<0.000000e+00> : vector<16x256xf32>
    %2 = tpu.matmul %0, %1, %cst {dimension_numbers = #tpu.dot_dimension_numbers<[1], [0], [0], [1], [0, 0, 1, 1], [], []>} : vector<16x8xf32>, vector<8x256xf32>, vector<16x256xf32> -> vector<16x256xf32>
    %c0_3 = arith.constant 0 : index
    %c0_4 = arith.constant 0 : index
    %3 = vector.load %arg3[%c0_3, %c0_4] : memref<16x256xf32, #tpu.memory_space<vmem>>, vector<16x256xf32>
    tpu.vector_store %arg3[%c0_3, %c0_4], %2 {strides = array<i32>} : memref<16x256xf32, #tpu.memory_space<vmem>>, vector<16x256xf32>,
    return
  }
  func.func @transform_0(%arg0: i32) -> (i32, i32) {
    %c0_i32 = arith.constant 0 : i32
    %c0_i32_0 = arith.constant 0 : i32
    %c0_i32_1 = arith.constant 0 : i32
    return %c0_i32, %c0_i32_0 : i32, i32
  }
  func.func @transform_1(%arg0: i32) -> (i32, i32) {
    %c0_i32 = arith.constant 0 : i32
    %c0_i32_0 = arith.constant 0 : i32
    return %c0_i32, %arg0 : i32, i32
  }
  func.func @transform_2(%arg0: i32) -> (i32, i32) {
    %c0_i32 = arith.constant 0 : i32
    %c0_i32_0 = arith.constant 0 : i32
    return %c0_i32, %arg0 : i32, i32
  }
}

</mosaic_0001>

<bundles_post_ra>
// kernel: tpu_custom_call.1
= control target key start
LH: loop header
LB: loop body
LE: loop exit
PB: predicated region body
PF: predicated region fallthrough
CT: control target
= control target key end

     0   :  { %vm16_vm0 = vcmask 64512   ;;  %s195_s0 = inlined_call_operand.vmem [shape: f32[16,8], index: 0, kind: input, shape index: {}]   ;;  %s196_s1 = inlined_call_operand.vmem [shape: f32[8,256], index: 1, kind: input, shape index: {}]   ;;  %s197_s2 = inlined_call_operand.hbm [shape: f32[16,256], index: 2, kind: output, shape index: {}]  }
   0x1   :  { %v15_v0 = vld [vmem:[%s196_s1 + $0x8] sm:$0xff]  ;;  %v14_v1 = vld [vmem:[%s196_s1] sm:$0xff] }
   0x2   :  { %23 = vmatprep.subr.mxu0 %v15_v0  ;;  %122 = vmatprep.subr.mxu1 %v15_v0  ;;  %v12_v2 = vld [vmem:[%s195_s0] sm:$0xff]  ;;  %v13_v3 = vld [vmem:[%s195_s0 + $0x8] sm:$0xff] }
   0x3   :  { %7 = vsyncpa [#allocation3], 0  ;;  %24 = vmatpush1.msra.mxu0 %v14_v1  ;;  %123 = vmatpush1.msra.mxu1 %v14_v1  ;;  %v152_v4 = vmov 0.0   ;;  %s153_s1 = smov [#allocation2]  }
   0x4   :  { %87 = vmatprep.mubr.f32.mxu0 %v152_v4  ;;  %93 = vmatprep.mubr.f32.mxu1 %v152_v4  ;;  %s109_s17 = sshll.u32 %s153_s1, 4  ;;  %s110_s17 = int_to_ptr.vmem [resolvable:$true] %s109_s17 }
   0x5   :  { %120 = vmatmul.mubr.msk.f32.vlgmr.msra.gmra.mrb[0].mxu0 %vm16_vm0, %v12_v2  ;;  %121 = vmatmul.mubr.msk.f32.vlgmr.msra.gmra.mrb[0].mxu1 %vm16_vm0, %v13_v3  ;;  %s128_s0 = scalar_lea.vmem %s110_s17, 512  ;;  %p133_p1 = scmp.lt.s32.totalorder %s110_s17, %s110_s17 }
   0x6   :  { %p129_p0 = scmp.ne.s32.totalorder %s110_s17, %s128_s0  ;;  %p134_p2 = scmp.lt.s32.totalorder %s128_s0, %s128_s0 }
   0x8   :  { %p135_p3 = por %p134_p2, %p133_p1 }
   0xa   :  { %p136_p4 = pnand %p135_p3, %p129_p0 }
  0xd8   :  { %v89_v5 = vpop.f32.mrb[0].mxu0  ;;  %v95_v6 = vpop.f32.mrb[0].mxu1 }
  0xd9   :  { %100 = vst [vmem:[#allocation2] sm:$0xff] %v89_v5  ;;  %102 = vst [vmem:[#allocation2 + $0x10] sm:$0xff] %v95_v6  ;;  %v91_v7 = vpop.f32.mrb[1].mxu0  ;;  %v97_v8 = vpop.f32.mrb[1].mxu1 }
  0xda   :  { %101 = vst [vmem:[#allocation2 + $0x8] sm:$0xff] %v91_v7  ;;  %103 = vst [vmem:[#allocation2 + $0x18] sm:$0xff] %v97_v8 }
  0xdb   :  { %139 = shalt.err (!%p136_p4)
}
  0xdc   :  { %s140_s20 = scalar_lea.hbm %s197_s2, 512 }
  0xdd   :  { %p141_p5 = scmp.ne.s32.totalorder %s197_s2, %s140_s20  ;;  %p144_p6 = scmp.lt.u32.totalorder %s140_s20, %s197_s2 }
  0xdf   :  { %p146_p7 = pnand %p144_p6, %p141_p5 }
  0xe1   :  { %149 = shalt.err (!%p146_p7)
}
  0xe2   :  { %s154_s25 = smov 256   ;;  %s155_s26 = smov 16  }
  0xe3   :  { %115 = dma.vmem_to_hbm [thread:$0]  %s110_s17, 512, %s197_s2, [#allocation3], %s154_s25, %s154_s25, %s155_s26  }
  0xe4   :  { %150 = dma.done.wait [#allocation3], 512  }
  0xe5   :  { %151 = vsyncadd [#allocation3], 4294966784 }
  0xe6   :  { %119 = vsyncpa [#allocation3], 1 }

</bundles_post_ra>
